<compile_context>
chip_gen: v7x
topology: tpu7x:2x2x1
jax: 0.10.0
libtpu: 0.0.40
codegen_flags: <defaults>
</compile_context>

<pallas_src>
import jax
import jax.numpy as jnp
from jax.experimental import pallas as pl
from jax.experimental.pallas import tpu as pltpu


def _model_kernel(x_ref, o_ref):
    # x_ref: (3, n, n) stacked [A, B, C] in VMEM.
    a = x_ref[0]
    b = x_ref[1]
    c = x_ref[2]

    out = (
        jnp.dot(a, a, preferred_element_type=jnp.float32)
        + jnp.dot(b, b, preferred_element_type=jnp.float32)
        - jnp.dot(c, c, preferred_element_type=jnp.float32)
    )
    o_ref[...] = out.astype(o_ref.dtype)


def model_forward(input1, input2, input3, input4):
    n = input1.shape[0]
    assert input1.shape == input2.shape == input3.shape == input4.shape == (n, n)

    # input4 only appears as t4 = D@D and t6 = D@D, which cancel exactly in
    # t1 + t2 - (t3 - t4) - t6, so it never needs to reach the kernel.
    del input4

    # Coalesce the three inputs into one array -> one DMA for this
    # latency-bound kernel (and the natural layout for a batched variant).
    x = jnp.stack(
        [
            input1.astype(jnp.float32),
            input2.astype(jnp.float32),
            input3.astype(jnp.float32),
        ],
        axis=0,
    )

    vmem_spec = pl.BlockSpec(memory_space=pltpu.MemorySpace.VMEM)
    return pl.pallas_call(
        _model_kernel,
        out_shape=jax.ShapeDtypeStruct((n, n), jnp.float32),
        in_specs=[vmem_spec],
        out_specs=vmem_spec,
    )(x)


if __name__ == "__main__":
    key = jax.random.PRNGKey(0)
    k1, k2, k3, k4 = jax.random.split(key, 4)
    input1 = jax.random.normal(k1, (5, 5), dtype=jnp.float32)
    input2 = jax.random.normal(k2, (5, 5), dtype=jnp.float32)
    input3 = jax.random.normal(k3, (5, 5), dtype=jnp.float32)
    input4 = jax.random.normal(k4, (5, 5), dtype=jnp.float32)

    out = model_forward(input1, input2, input3, input4)
    out = jax.block_until_ready(out)

    # Reference in plain JAX, same op order as the PyTorch forward.
    t1 = input1 @ input1
    t2 = input2 @ input2
    t3 = input3 @ input3
    t4 = input4 @ input4
    t5 = t3 - t4
    t6 = input4 @ input4
    ref = t1 + t2 - t5 - t6

    assert out.shape == (5, 5)
    assert jnp.allclose(out, ref, atol=1e-5, rtol=1e-5)

    print("KERNEL_OK")
</pallas_src>

<mosaic_0001>
module attributes {stable_mosaic.version = 11 : i64} {
  func.func @_model_kernel(%arg0: memref<3x5x5xf32, #tpu.memory_space<vmem>>, %arg1: memref<5x5xf32, #tpu.memory_space<vmem>>) attributes {dimension_semantics = [], scalar_prefetch = 0 : i64, scratch_operands = 0 : i64, tpu.core_type = #tpu.core_type<tc>} {
    %c0 = arith.constant 0 : index
    %c0_0 = arith.constant 0 : index
    %c0_1 = arith.constant 0 : index
    %0 = vector.load %arg0[%c0, %c0_0, %c0_1] : memref<3x5x5xf32, #tpu.memory_space<vmem>>, vector<1x5x5xf32>
    %1 = vector.shape_cast %0 : vector<1x5x5xf32> to vector<5x5xf32>
    %c1 = arith.constant 1 : index
    %c0_2 = arith.constant 0 : index
    %c0_3 = arith.constant 0 : index
    %2 = vector.load %arg0[%c1, %c0_2, %c0_3] : memref<3x5x5xf32, #tpu.memory_space<vmem>>, vector<1x5x5xf32>
    %3 = vector.shape_cast %2 : vector<1x5x5xf32> to vector<5x5xf32>
    %c2 = arith.constant 2 : index
    %c0_4 = arith.constant 0 : index
    %c0_5 = arith.constant 0 : index
    %4 = vector.load %arg0[%c2, %c0_4, %c0_5] : memref<3x5x5xf32, #tpu.memory_space<vmem>>, vector<1x5x5xf32>
    %5 = vector.shape_cast %4 : vector<1x5x5xf32> to vector<5x5xf32>
    %cst = arith.constant dense<0.000000e+00> : vector<5x5xf32>
    %6 = tpu.matmul %1, %1, %cst {dimension_numbers = #tpu.dot_dimension_numbers<[1], [0], [0], [1], [0, 0, 1, 1], [], []>} : vector<5x5xf32>, vector<5x5xf32>, vector<5x5xf32> -> vector<5x5xf32>
    %cst_6 = arith.constant dense<0.000000e+00> : vector<5x5xf32>
    %7 = tpu.matmul %3, %3, %cst_6 {dimension_numbers = #tpu.dot_dimension_numbers<[1], [0], [0], [1], [0, 0, 1, 1], [], []>} : vector<5x5xf32>, vector<5x5xf32>, vector<5x5xf32> -> vector<5x5xf32>
    %8 = arith.addf %6, %7 : vector<5x5xf32>
    %cst_7 = arith.constant dense<0.000000e+00> : vector<5x5xf32>
    %9 = tpu.matmul %5, %5, %cst_7 {dimension_numbers = #tpu.dot_dimension_numbers<[1], [0], [0], [1], [0, 0, 1, 1], [], []>} : vector<5x5xf32>, vector<5x5xf32>, vector<5x5xf32> -> vector<5x5xf32>
    %10 = arith.subf %8, %9 : vector<5x5xf32>
    %c0_8 = arith.constant 0 : index
    %c0_9 = arith.constant 0 : index
    %11 = vector.load %arg1[%c0_8, %c0_9] : memref<5x5xf32, #tpu.memory_space<vmem>>, vector<5x5xf32>
    tpu.vector_store %arg1[%c0_8, %c0_9], %10 {strides = array<i32>} : memref<5x5xf32, #tpu.memory_space<vmem>>, vector<5x5xf32>,
    return
  }
}

</mosaic_0001>

<bundles_post_ra>
// kernel: tpu_custom_call.1
= control target key start
LH: loop header
LB: loop body
LE: loop exit
PB: predicated region body
PF: predicated region fallthrough
CT: control target
= control target key end

     0   :  { %vm18_vm0 = vcmask 1044480   ;;  %vm14_vm1 = vcmask 39936   ;;  %v316_v1 = vmov 0.0   ;;  %vm317_vm2 = vmmov 0   ;;  %s353_s0 = inlined_call_operand.vmem [shape: f32[3,5,5], index: 0, kind: input, shape index: {}]   ;;  %s354_s1 = inlined_call_operand.hbm [shape: f32[5,5], index: 1, kind: output, shape index: {}]  }
   0x1   :  { %v258_v0 = vld [vmem:[%s353_s0 + $0x8] sm:$0x1f]  ;;  %272 = vmatprep.subr.mxu0 %v316_v1  ;;  %274 = vmatprep.mubr.msk.f32.mxu0 %vm317_vm2, %v316_v1  ;;  %v9_v2 = vld [vmem:[%s353_s0] sm:$0x1f] }
   0x2   :  { %6 = vsyncpa [#allocation3], 0  ;;  %273 = vmatpush3.msk.msra.mxu0 %vm18_vm0, %v258_v0  ;;  %282 = vmatprep.subr.mxu1 %v316_v1  ;;  %v259_v3 = vld [vmem:[%s353_s0 + $0x10] sm:$0x1f]  ;;  %s318_s12 = smov [#allocation2]   ;;  %vm242_vm3 = vcmask 36864  }
   0x3   :  { %275 = vmatmul.mubr.msk.f32.vlgmr.msra.gmra.mrb[0].mxu0 %vm14_vm1, %v258_v0  ;;  %277 = vmatprep.subr.mxu0 %v316_v1  ;;  %s250_s13 = sshll.u32 %s318_s12, 4  ;;  %s251_s13 = int_to_ptr.vmem [resolvable:$true] %s250_s13 }
   0x4   :  { %278 = vmatpush3.msk.msra.mxu0 %vm18_vm0, %v9_v2  ;;  %279 = vmatprep.mubr.msk.f32.mxu0 %vm317_vm2, %v316_v1  ;;  %s292_s0 = scalar_lea.vmem %s251_s13, 128  ;;  %p297_p1 = scmp.lt.s32.totalorder %s251_s13, %s251_s13 }
   0x5   :  { %283 = vmatpush3.msk.msra.mxu1 %vm18_vm0, %v259_v3  ;;  %284 = vmatprep.mubr.msk.f32.mxu1 %vm317_vm2, %v316_v1  ;;  %p293_p0 = scmp.ne.s32.totalorder %s251_s13, %s292_s0  ;;  %p298_p2 = scmp.lt.s32.totalorder %s292_s0, %s292_s0 }
   0x6   :  { %285 = vmatmul.mubr.msk.f32.vlgmr.msra.gmra.mrb[0].mxu1 %vm14_vm1, %v259_v3 }
   0x7   :  { %p299_p3 = por %p298_p2, %p297_p1 }
   0x9   :  { %p300_p4 = pnand %p299_p3, %p293_p0 }
   0xb   :  { %280 = vmatmul.mubr.msk.f32.vlgmr.msra.gmra.mrb[0].mxu0 %vm14_vm1, %v9_v2 }
  0xd9   :  { %v237_v4 = vpop.f32.mrb[0].mxu1 }
  0xda   :  { %v286_v5 = vpop.f32.mrb[1].mxu1 }
  0xde   :  { %v162_v6 = vpop.f32.mrb[0].mxu0 }
  0xdf   :  { %v241_v7 = vsub.f32 %v162_v6, %v237_v4  ;;  %v281_v8 = vpop.f32.mrb[1].mxu0 }
  0xe1   :  { %243 = vst.msk [vmem:[#allocation2] sm:$0x1f] %vm242_vm3, %v241_v7 }
  0xe2   :  { %303 = shalt.err (!%p300_p4)
}
  0xe3   :  { %s304_s16 = scalar_lea.hbm %s354_s1, 128 }
  0xe4   :  { %p305_p5 = scmp.ne.s32.totalorder %s354_s1, %s304_s16  ;;  %p308_p6 = scmp.lt.u32.totalorder %s304_s16, %s354_s1 }
  0xe6   :  { %p310_p7 = pnand %p308_p6, %p305_p5 }
  0xe8   :  { %313 = shalt.err (!%p310_p7)
}
  0xe9   :  { %253 = dma.vmem_to_hbm [thread:$0]  %s251_s13, 128, %s354_s1, [#allocation3]  }
  0xea   :  { %314 = dma.done.wait [#allocation3], 128  }
  0xeb   :  { %315 = vsyncadd [#allocation3], 4294967168 }
  0xec   :  { %257 = vsyncpa [#allocation3], 1 }

</bundles_post_ra>
